<compile_context>
chip_gen: v7x
topology: tpu7x:2x2x1
jax: 0.10.0
libtpu: 0.0.40
codegen_flags: <defaults>
</compile_context>

<pallas_src>
import jax
import jax.numpy as jnp
from jax.experimental import pallas as pl
from jax.experimental.pallas import tpu as pltpu

EPS = 1e-6
GROUPS = 32


# --------------------------------------------------------------------------
# Kernel 1: per-channel sum / sum-of-squares over spatial positions (tiled N)
# --------------------------------------------------------------------------
def _gn_stats_kernel(x_ref, s1_ref, s2_ref):
    @pl.when(pl.program_id(1) == 0)
    def _():
        s1_ref[...] = jnp.zeros_like(s1_ref)
        s2_ref[...] = jnp.zeros_like(s2_ref)

    x = x_ref[0].astype(jnp.float32)                    # (C, Tn)
    s1_ref[0] += jnp.sum(x, axis=1, keepdims=True)      # (C, 1)
    s2_ref[0] += jnp.sum(x * x, axis=1, keepdims=True)  # (C, 1)


# --------------------------------------------------------------------------
# Kernel 2: GroupNorm apply + fused Q/K/V 1x1-conv projections (bf16 matmuls)
# --------------------------------------------------------------------------
def _gn_qkv_kernel(x_ref, mean_ref, rstd_ref, gamma_ref, beta_ref,
                   wq_ref, bq_ref, wk_ref, bk_ref, wv_ref, bv_ref,
                   q_ref, k_ref, v_ref):
    x = x_ref[0].astype(jnp.float32)                    # (C, Tn)
    h = (x - mean_ref[0]) * rstd_ref[0]                 # GroupNorm normalize
    h = h * gamma_ref[...] + beta_ref[...]              # per-channel affine
    hb = h.astype(jnp.bfloat16)

    # 1x1 conv == channel matmul; weights already bf16, q-scale folded into wq/bq.
    q = jnp.dot(wq_ref[...], hb, preferred_element_type=jnp.float32) + bq_ref[...]
    k = jnp.dot(wk_ref[...], hb, preferred_element_type=jnp.float32) + bk_ref[...]
    v = jnp.dot(wv_ref[...], hb, preferred_element_type=jnp.float32) + bv_ref[...]

    q_ref[0] = q.astype(q_ref.dtype)
    k_ref[0] = k.astype(k_ref.dtype)
    v_ref[0] = v.astype(v_ref.dtype)


# --------------------------------------------------------------------------
# Kernel 3: flash-style attention + proj_out + residual
#   grid = (B, num_q_tiles, num_kv_tiles); KV axis is the reduction axis.
# --------------------------------------------------------------------------
def _flash_attn_kernel(q_ref, k_ref, v_ref, x_ref, wp_ref, bp_ref, o_ref,
                       m_sc, l_sc, acc_sc):
    j = pl.program_id(2)

    @pl.when(j == 0)
    def _():
        m_sc[...] = jnp.full_like(m_sc, -jnp.inf)
        l_sc[...] = jnp.zeros_like(l_sc)
        acc_sc[...] = jnp.zeros_like(acc_sc)

    q = q_ref[0]                      # (C, Tq) bf16 (scale pre-folded)
    k = k_ref[0]                      # (C, Tk) bf16
    v = v_ref[0]                      # (C, Tk) bf16

    # s[jk, iq] = sum_c k[c, jk] * q[c, iq]   (transposed logits tile, f32)
    s = jax.lax.dot_general(k, q, (((0,), (0,)), ((), ())),
                            preferred_element_type=jnp.float32)   # (Tk, Tq)

    m_prev = m_sc[...]                                            # (1, Tq)
    m_new = jnp.maximum(m_prev, jnp.max(s, axis=0, keepdims=True))
    alpha = jnp.exp(m_prev - m_new)                               # (1, Tq)
    p = jnp.exp(s - m_new)                                        # (Tk, Tq) f32

    l_sc[...] = alpha * l_sc[...] + jnp.sum(p, axis=0, keepdims=True)
    acc_sc[...] = alpha * acc_sc[...] + jnp.dot(
        v, p.astype(v.dtype), preferred_element_type=jnp.float32)  # (C, Tq)
    m_sc[...] = m_new

    @pl.when(j == pl.num_programs(2) - 1)
    def _():
        # Deferred softmax normalization: one approx reciprocal per query.
        inv_l = pl.reciprocal(l_sc[...], approx=True)              # (1, Tq)
        attn = (acc_sc[...] * inv_l).astype(jnp.bfloat16)          # (C, Tq)
        proj = jnp.dot(wp_ref[...], attn,
                       preferred_element_type=jnp.float32) + bp_ref[...]
        o_ref[0] = (x_ref[0].astype(jnp.float32) + proj).astype(o_ref.dtype)


# --------------------------------------------------------------------------
# Wrapper
# --------------------------------------------------------------------------
def _pick_lane_tile(n, target):
    """Tile size for a lane-major dim: equal to n, or a multiple of 128 dividing n."""
    if n <= target:
        return n
    t = (target // 128) * 128
    while t >= 128:
        if n % t == 0:
            return t
        t -= 128
    return n


def self_attention_pallas(x_nchw, params, *,
                          tn_target=512, tq_target=256, tk_target=512):
    """x_nchw: (B, C, H, W).  params: dict of weights (see init_params)."""
    B, C, H, W = x_nchw.shape
    N = H * W
    assert C % GROUPS == 0, "GroupNorm(32, C) requires C divisible by 32"
    gsz = C // GROUPS

    # Free reshape (merges trailing contiguous dims): no HBM transpose.
    x = x_nchw.reshape(B, C, N)

    Tn = _pick_lane_tile(N, tn_target)
    Tq = _pick_lane_tile(N, tq_target)
    Tk = _pick_lane_tile(N, tk_target)
    n_q = N // Tq
    n_k = N // Tk

    # ---------------- Pass 1: GroupNorm statistics (tiled reduction) --------
    s1, s2 = pl.pallas_call(
        _gn_stats_kernel,
        out_shape=(jax.ShapeDtypeStruct((B, C, 1), jnp.float32),
                   jax.ShapeDtypeStruct((B, C, 1), jnp.float32)),
        grid=(B, N // Tn),
        in_specs=[pl.BlockSpec((1, C, Tn), lambda b, n: (b, 0, n))],
        out_specs=(pl.BlockSpec((1, C, 1), lambda b, n: (b, 0, 0)),
                   pl.BlockSpec((1, C, 1), lambda b, n: (b, 0, 0))),
        compiler_params=pltpu.CompilerParams(
            dimension_semantics=("parallel", "arbitrary")),
        cost_estimate=pl.CostEstimate(
            flops=3 * B * N * C, transcendentals=0,
            bytes_accessed=4 * B * N * C + 8 * B * C),
    )(x)

    # Tiny O(B*C) per-group finalize in plain JAX (full-N stats kept in f32).
    denom = jnp.float32(N * gsz)
    gs1 = s1.reshape(B, GROUPS, gsz).sum(axis=-1, keepdims=True)
    gs2 = s2.reshape(B, GROUPS, gsz).sum(axis=-1, keepdims=True)
    mean_g = gs1 / denom
    var_g = gs2 / denom - mean_g * mean_g
    rstd_g = jax.lax.rsqrt(var_g + EPS)
    mean = jnp.broadcast_to(mean_g, (B, GROUPS, gsz)).reshape(B, C, 1)
    rstd = jnp.broadcast_to(rstd_g, (B, GROUPS, gsz)).reshape(B, C, 1)

    # ---------------- Host-side weight prep (bf16 + folded q-scale) ---------
    scale = jnp.float32(C) ** jnp.float32(-0.5)
    wq = (params["wq"].astype(jnp.float32) * scale).astype(jnp.bfloat16)
    wk = params["wk"].astype(jnp.bfloat16)
    wv = params["wv"].astype(jnp.bfloat16)
    wp = params["wp"].astype(jnp.bfloat16)
    bq = (params["bq"].astype(jnp.float32) * scale).reshape(C, 1)
    bk = params["bk"].astype(jnp.float32).reshape(C, 1)
    bv = params["bv"].astype(jnp.float32).reshape(C, 1)
    bp = params["bp"].astype(jnp.float32).reshape(C, 1)
    gamma = params["gn_gamma"].astype(jnp.float32).reshape(C, 1)
    beta = params["gn_beta"].astype(jnp.float32).reshape(C, 1)

    # ---------------- Pass 2: GroupNorm apply + QKV projections -------------
    xt = pl.BlockSpec((1, C, Tn), lambda b, n: (b, 0, n))
    stat = pl.BlockSpec((1, C, 1), lambda b, n: (b, 0, 0))
    col2 = pl.BlockSpec((C, 1), lambda b, n: (0, 0))
    mat2 = pl.BlockSpec((C, C), lambda b, n: (0, 0))

    q, k, v = pl.pallas_call(
        _gn_qkv_kernel,
        out_shape=tuple(jax.ShapeDtypeStruct((B, C, N), jnp.bfloat16)
                        for _ in range(3)),
        grid=(B, N // Tn),
        in_specs=[xt, stat, stat, col2, col2,
                  mat2, col2, mat2, col2, mat2, col2],
        out_specs=(xt, xt, xt),
        compiler_params=pltpu.CompilerParams(
            dimension_semantics=("parallel", "parallel")),
        cost_estimate=pl.CostEstimate(
            flops=6 * B * N * C * C, transcendentals=0,
            bytes_accessed=4 * B * N * C + 6 * B * N * C + 6 * C * C),
    )(x, mean, rstd, gamma, beta, wq, bq, wk, bk, wv, bv)

    # ---------------- Pass 3: flash attention + proj_out + residual ---------
    qspec = pl.BlockSpec((1, C, Tq), lambda b, i, j: (b, 0, i))
    kspec = pl.BlockSpec((1, C, Tk), lambda b, i, j: (b, 0, j))
    mat3 = pl.BlockSpec((C, C), lambda b, i, j: (0, 0))
    col3 = pl.BlockSpec((C, 1), lambda b, i, j: (0, 0))

    out = pl.pallas_call(
        _flash_attn_kernel,
        out_shape=jax.ShapeDtypeStruct((B, C, N), x.dtype),
        grid=(B, n_q, n_k),
        in_specs=[qspec, kspec, kspec, qspec, mat3, col3],
        out_specs=qspec,
        scratch_shapes=[pltpu.VMEM((1, Tq), jnp.float32),   # running max
                        pltpu.VMEM((1, Tq), jnp.float32),   # running sum
                        pltpu.VMEM((C, Tq), jnp.float32)],  # output accumulator
        compiler_params=pltpu.CompilerParams(
            dimension_semantics=("parallel", "parallel", "arbitrary")),
        cost_estimate=pl.CostEstimate(
            flops=B * (4 * N * N * C + 2 * N * C * C),
            transcendentals=B * N * N,
            bytes_accessed=(2 * B * N * C              # q
                            + 4 * B * N * C * n_q      # k, v re-read per q tile
                            + 8 * B * N * C            # x residual + out (f32)
                            + 2 * C * C)),
    )(q, k, v, x, wp, bp)

    return out.reshape(B, C, H, W)


# --------------------------------------------------------------------------
# Pure-JAX reference (mirrors the PyTorch module) and parameter init
# --------------------------------------------------------------------------
def self_attention_ref(x, params):
    B, C, H, W = x.shape
    N = H * W
    gsz = C // GROUPS
    xf = x.astype(jnp.float32)
    xg = xf.reshape(B, GROUPS, gsz * H * W)
    mu = xg.mean(axis=-1, keepdims=True)
    var = xg.var(axis=-1, keepdims=True)
    h = ((xg - mu) * jax.lax.rsqrt(var + EPS)).reshape(B, C, N)
    h = h * params["gn_gamma"].reshape(1, C, 1) + params["gn_beta"].reshape(1, C, 1)
    q = jnp.einsum("oc,bcn->bon", params["wq"], h) + params["bq"].reshape(1, C, 1)
    k = jnp.einsum("oc,bcn->bon", params["wk"], h) + params["bk"].reshape(1, C, 1)
    v = jnp.einsum("oc,bcn->bon", params["wv"], h) + params["bv"].reshape(1, C, 1)
    logits = jnp.einsum("bci,bcj->bij", q, k) * (float(C) ** -0.5)
    p = jax.nn.softmax(logits, axis=2)
    attn = jnp.einsum("bij,bcj->bci", p, v)
    proj = jnp.einsum("oc,bcn->bon", params["wp"], attn) + params["bp"].reshape(1, C, 1)
    return (xf.reshape(B, C, N) + proj).reshape(B, C, H, W).astype(x.dtype)


def init_params(key, C):
    """Synthetic parameters matching the PyTorch module (1x1 conv weights are (C_out, C_in))."""
    ks = jax.random.split(key, 10)
    scale = 1.0 / jnp.sqrt(jnp.float32(C))
    return {
        "gn_gamma": 1.0 + 0.1 * jax.random.normal(ks[8], (C,), jnp.float32),
        "gn_beta": 0.05 * jax.random.normal(ks[9], (C,), jnp.float32),
        "wq": jax.random.normal(ks[0], (C, C), jnp.float32) * scale,
        "bq": jax.random.normal(ks[1], (C,), jnp.float32) * 0.01,
        "wk": jax.random.normal(ks[2], (C, C), jnp.float32) * scale,
        "bk": jax.random.normal(ks[3], (C,), jnp.float32) * 0.01,
        "wv": jax.random.normal(ks[4], (C, C), jnp.float32) * scale,
        "bv": jax.random.normal(ks[5], (C,), jnp.float32) * 0.01,
        "wp": jax.random.normal(ks[6], (C, C), jnp.float32) * scale,
        "bp": jax.random.normal(ks[7], (C,), jnp.float32) * 0.01,
    }


if __name__ == "__main__":
    key = jax.random.PRNGKey(0)
    k_x, k_p = jax.random.split(key)

    B, C, H, W = 2, 32, 8, 8            # GroupNorm(32, C) needs C % 32 == 0
    x = jax.random.normal(k_x, (B, C, H, W), jnp.float32)
    params = init_params(k_p, C)

    out = jax.block_until_ready(self_attention_pallas(x, params))
    assert out.shape == (B, C, H, W) and out.dtype == x.dtype

    # Loose tolerance: kernel uses bf16 matmul operands + approx reciprocal.
    ref = jax.block_until_ready(self_attention_ref(x, params))
    max_err = float(jnp.max(jnp.abs(out - ref)))
    assert max_err < 1e-1, f"max abs error vs reference: {max_err}"

    print("KERNEL_OK")
</pallas_src>

<mosaic_0001>
module attributes {stable_mosaic.version = 11 : i64} {
  func.func @_gn_stats_kernel(%arg0: i32, %arg1: i32, %arg2: memref<1x32x64xf32, #tpu.memory_space<vmem>>, %arg3: memref<1x32x1xf32, #tpu.memory_space<vmem>>, %arg4: memref<1x32x1xf32, #tpu.memory_space<vmem>>) attributes {dimension_semantics = [#tpu.dimension_semantics<parallel>, #tpu.dimension_semantics<arbitrary>], iteration_bounds = array<i64: 2, 1>, scalar_prefetch = 0 : i64, scratch_operands = 0 : i64, tpu.core_type = #tpu.core_type<tc>, window_params = [{transform_indices = @transform_0, window_bounds = array<i64: 1, 32, 64>}, {transform_indices = @transform_1, window_bounds = array<i64: 1, 32, 1>}, {transform_indices = @transform_2, window_bounds = array<i64: 1, 32, 1>}]} {
    %c0_i32 = arith.constant 0 : i32
    %0 = arith.cmpi eq, %arg1, %c0_i32 : i32
    %1 = arith.extui %0 : i1 to i32
    %c0_i32_0 = arith.constant 0 : i32
    %2 = arith.cmpi ne, %1, %c0_i32_0 : i32
    scf.if %2 {
      %cst_16 = arith.constant 0.000000e+00 : f32
      %22 = vector.broadcast %cst_16 : f32 to vector<1x32x1xf32>
      %c0_17 = arith.constant 0 : index
      %c0_18 = arith.constant 0 : index
      %c0_19 = arith.constant 0 : index
      %23 = vector.load %arg3[%c0_17, %c0_18, %c0_19] : memref<1x32x1xf32, #tpu.memory_space<vmem>>, vector<1x32x1xf32>
      tpu.vector_store %arg3[%c0_17, %c0_18, %c0_19], %22 {strides = array<i32>} : memref<1x32x1xf32, #tpu.memory_space<vmem>>, vector<1x32x1xf32>,
      %cst_20 = arith.constant 0.000000e+00 : f32
      %24 = vector.broadcast %cst_20 : f32 to vector<1x32x1xf32>
      %c0_21 = arith.constant 0 : index
      %c0_22 = arith.constant 0 : index
      %c0_23 = arith.constant 0 : index
      %25 = vector.load %arg4[%c0_21, %c0_22, %c0_23] : memref<1x32x1xf32, #tpu.memory_space<vmem>>, vector<1x32x1xf32>
      tpu.vector_store %arg4[%c0_21, %c0_22, %c0_23], %24 {strides = array<i32>} : memref<1x32x1xf32, #tpu.memory_space<vmem>>, vector<1x32x1xf32>,
    } else {
    }
    %c0 = arith.constant 0 : index
    %c0_1 = arith.constant 0 : index
    %c0_2 = arith.constant 0 : index
    %3 = vector.load %arg2[%c0, %c0_1, %c0_2] : memref<1x32x64xf32, #tpu.memory_space<vmem>>, vector<1x32x64xf32>
    %4 = vector.shape_cast %3 : vector<1x32x64xf32> to vector<32x64xf32>
    %c0_3 = arith.constant 0 : index
    %c0_4 = arith.constant 0 : index
    %c0_5 = arith.constant 0 : index
    %5 = vector.load %arg3[%c0_3, %c0_4, %c0_5] : memref<1x32x1xf32, #tpu.memory_space<vmem>>, vector<1x32x1xf32>
    %6 = vector.shape_cast %5 : vector<1x32x1xf32> to vector<32x1xf32>
    %cst = arith.constant dense<0.000000e+00> : vector<32xf32>
    %7 = vector.multi_reduction <add>, %4, %cst [1] : vector<32x64xf32> to vector<32xf32>
    %8 = vector.shape_cast %7 : vector<32xf32> to vector<32x1xf32>
    %9 = arith.addf %6, %8 : vector<32x1xf32>
    %c0_6 = arith.constant 0 : index
    %c0_7 = arith.constant 0 : index
    %c0_8 = arith.constant 0 : index
    %10 = vector.load %arg3[%c0_6, %c0_7, %c0_8] : memref<1x32x1xf32, #tpu.memory_space<vmem>>, vector<1x32x1xf32>
    %11 = vector.shape_cast %10 : vector<1x32x1xf32> to vector<32x1xf32>
    %12 = vector.shape_cast %9 : vector<32x1xf32> to vector<1x32x1xf32>
    tpu.vector_store %arg3[%c0_6, %c0_7, %c0_8], %12 {strides = array<i32>} : memref<1x32x1xf32, #tpu.memory_space<vmem>>, vector<1x32x1xf32>,
    %c0_9 = arith.constant 0 : index
    %c0_10 = arith.constant 0 : index
    %c0_11 = arith.constant 0 : index
    %13 = vector.load %arg4[%c0_9, %c0_10, %c0_11] : memref<1x32x1xf32, #tpu.memory_space<vmem>>, vector<1x32x1xf32>
    %14 = vector.shape_cast %13 : vector<1x32x1xf32> to vector<32x1xf32>
    %15 = arith.mulf %4, %4 : vector<32x64xf32>
    %cst_12 = arith.constant dense<0.000000e+00> : vector<32xf32>
    %16 = vector.multi_reduction <add>, %15, %cst_12 [1] : vector<32x64xf32> to vector<32xf32>
    %17 = vector.shape_cast %16 : vector<32xf32> to vector<32x1xf32>
    %18 = arith.addf %14, %17 : vector<32x1xf32>
    %c0_13 = arith.constant 0 : index
    %c0_14 = arith.constant 0 : index
    %c0_15 = arith.constant 0 : index
    %19 = vector.load %arg4[%c0_13, %c0_14, %c0_15] : memref<1x32x1xf32, #tpu.memory_space<vmem>>, vector<1x32x1xf32>
    %20 = vector.shape_cast %19 : vector<1x32x1xf32> to vector<32x1xf32>
    %21 = vector.shape_cast %18 : vector<32x1xf32> to vector<1x32x1xf32>
    tpu.vector_store %arg4[%c0_13, %c0_14, %c0_15], %21 {strides = array<i32>} : memref<1x32x1xf32, #tpu.memory_space<vmem>>, vector<1x32x1xf32>,
    return
  }
  func.func @transform_0(%arg0: i32, %arg1: i32) -> (i32, i32, i32) {
    %c0_i32 = arith.constant 0 : i32
    %c0_i32_0 = arith.constant 0 : i32
    return %arg0, %c0_i32, %arg1 : i32, i32, i32
  }
  func.func @transform_1(%arg0: i32, %arg1: i32) -> (i32, i32, i32) {
    %c0_i32 = arith.constant 0 : i32
    %c0_i32_0 = arith.constant 0 : i32
    %c0_i32_1 = arith.constant 0 : i32
    return %arg0, %c0_i32, %c0_i32_0 : i32, i32, i32
  }
  func.func @transform_2(%arg0: i32, %arg1: i32) -> (i32, i32, i32) {
    %c0_i32 = arith.constant 0 : i32
    %c0_i32_0 = arith.constant 0 : i32
    %c0_i32_1 = arith.constant 0 : i32
    return %arg0, %c0_i32, %c0_i32_0 : i32, i32, i32
  }
}

</mosaic_0001>

<bundles_post_ra>
// kernel: tpu_custom_call.1
= control target key start
LH: loop header
LB: loop body
LE: loop exit
PB: predicated region body
PF: predicated region fallthrough
CT: control target
= control target key end

     0   :  { %8 = vsyncpa [#allocation3], 0  ;;  %s736_s0 = inlined_call_operand.hbm [shape: f32[2,32,64], index: 0, kind: input, shape index: {}]   ;;  %s737_s1 = inlined_call_operand.vmem [shape: f32[2,32,1], index: 1, kind: output, shape index: {0}]   ;;  %s738_s2 = inlined_call_operand.vmem [shape: f32[2,32,1], index: 2, kind: output, shape index: {1}]  }
   0x1   :  { %10 = vsyncpa [#allocation3 + $0x1], 0  ;;  %s550_s9 = smov 0   ;;  %s552_s10 = smov 0  }
   0x2   :  { %s554_s11 = smov 0   ;;  %s556_s12 = smov 0  }
   0x3   :  { %s558_s13 = smov 0   ;;  %s560_s14 = smov 0  }
   0x4 LB: > { %s373_s15 = sadd.s32 4294967295, %s529_s14   ;;  %s28_s16 = sadd.s32 1, %s525_s13  ;;  %s529_s14 = sphi %s560_s14, %s16_s14   ;;  %s525_s13 = sphi %s558_s13, %s746_s13   ;;  %s521_s12 = sphi %s556_s12, %s745_s12   ;;  %s517_s11 = sphi %s554_s11, %s744_s11   ;;  %s513_s10 = sphi %s552_s10, %s743_s10   ;;  %s509_s9 = sphi %s550_s9, %s742_s9  }
   0x5   : > { %p30_p0 = scmp.ge.s32.totalorder %s28_s16, 2  ;;  %s37_s17 = sadd.s32 1, %s517_s11 }
   0x6   : > { %p44_p1 = scmp.ne.s32.totalorder %s517_s11, %s513_s10  ;;  %p45_p2 = scmp.eq.s32.totalorder %s529_s14, 0 }
   0x7   : > { %s748_s16 = smov (%p30_p0, %s28_s16), 0  ;;  %p50_p4 = scmp.ne.s32.totalorder %s513_s10, %s509_s9 }
   0x8   : > { %p586_p3 = por %p45_p2, %p44_p1  ;;  %s32_s19 = ssub.s32 %s525_s13, %s748_s16 }
   0x9   : > { %p51_p5 = scmp.eq.s32.totalorder %s373_s15, 0  ;;  %p35_p6 = scmp.eq.s32.totalorder %s32_s19, 0 }
   0xa   : > { %p397_p8 = scmp.lt.s32.totalorder %s529_s14, 2  ;;  %s126_s22 = sand.u32 1, %s517_s11  }
   0xb   : > { %p593_p7 = por %p51_p5, %p50_p4  ;;  %s388_s23 = sshll.u32 %s525_s13, 9 }
   0xc   : > { %s599_s21 = scalar_select %p35_p6, %s517_s11, %s37_s17  }
   0xd   : > { %s377_s24 = sshll.u32 %s126_s22, 5  ;;  %s606_s27 = scalar_lea.hbm %s736_s0, %s388_s23 }
   0xe   : > { %s130_s28 = scalar_lea.vmem [#allocation2], %s377_s24  ;;  %p610_p9 = pnand %p397_p8, %p586_p3 }
   0xf   : > { %s138_s29 = sshll.u32 %s130_s28, 4  ;;  %s616_s3 = scalar_lea.sflag [#allocation3], %s126_s22  ;;  %s614_s29 = int_to_ptr.vmem [resolvable:$true] %s138_s29 }
  0x10   : > { %s449_s4 = scalar_lea.hbm %s606_s27, 512  ;;  %p451_p11 = pneg %p610_p9 }
  0x11   : > { %p450_p10 = scmp.ne.s32.totalorder %s606_s27, %s449_s4  ;;  %s454_s7 = scalar_lea.hbm %s736_s0, 1024 }
  0x12   : > { %p455_p0 = scmp.lt.u32.totalorder %s606_s27, %s736_s0  ;;  %p456_p1 = scmp.lt.u32.totalorder %s454_s7, %s449_s4 }
  0x13   : > { %p452_p12 = pnand %p451_p11, %p450_p10  ;;  %p458_p3 = scmp.lt.u32.totalorder %s449_s4, %s606_s27 }
  0x14   : > { %p457_p2 = por %p456_p1, %p455_p0 }
  0x15   : > { %p453_p13 = pneg %p452_p12 }
  0x16   : > { %p459_p4 = por %p458_p3, %p457_p2 }
  0x18   : > { %p460_p5 = pnand %p459_p4, %p453_p13 }
  0x1a   : > { %463 = shalt.err (!%p460_p5)
}
  0x1b   : > { %s464_s15 = scalar_lea.vmem %s614_s29, 512  ;;  %s531_s17 = smov [#allocation2]  }
  0x1c   : > { %p465_p6 = scmp.ne.s32.totalorder %s614_s29, %s464_s15  ;;  %s469_s18 = sshll.u32 %s531_s17, 4  ;;  %s470_s18 = int_to_ptr.vmem [resolvable:$false] %s469_s18 }
  0x1d   : > { %s471_s19 = scalar_lea.vmem %s470_s18, 1024  ;;  %p472_p12 = scmp.lt.s32.totalorder %s614_s29, %s470_s18 }
  0x1e   : > { %p467_p8 = pnand %p465_p6, %p451_p11  ;;  %p473_p0 = scmp.lt.s32.totalorder %s471_s19, %s464_s15 }
  0x20   : > { %p468_p10 = pneg %p467_p8  ;;  %p474_p1 = por %p473_p0, %p472_p12 }
  0x22   : > { %p475_p2 = pnand %p474_p1, %p468_p10 }
  0x24   : > { %478 = shalt.err (!%p475_p2)
}
  0x25   : > { %s532_s22 = smov 128   ;;  %s533_s23 = smov 8  }
  0x26   : > { %396 = dma.hbm_to_vmem [thread:$0]  (!%p610_p9), %s606_s27, 512, %s614_s29, %s616_s3, %s532_s22, %s532_s22, %s533_s23  }
  0x27   : > { %p380_p11 = scmp.ge.s32.totalorder %s529_s14, 1  ;;  %p146_p13 = scmp.lt.s32.totalorder %s529_s14, 3 }
  0x29   : > { %p147_p3 = pnand %p380_p11, %p146_p13 }
  0x2a   : > { %s152_s24 = sand.u32 (!%p147_p3), 1, %s513_s10  }
  0x2b   : > { %150 = sbr.rel (%p147_p3) target bundleno = 211 (0xd3), region = 24  ;;  %s381_s25 = sshll.u32 (!%p147_p3), %s152_s24, 5 }
  0x2c   : > { %s153_s26 = scalar_lea.sflag (!%p147_p3), [#allocation3], %s152_s24  ;;  %s156_s28 = scalar_lea.vmem (!%p147_p3), [#allocation2], %s381_s25 }
  0x32   : > { %504 = dma.done.wait (%p593_p7), %s153_s26, 512  }
  0x33   : > { %506 = vsyncadd (%p593_p7), %s153_s26, 4294966784  ;;  %p182_p4 = scmp.lt.s32.totalorder %s521_s12, 1  ;;  %vm196_vm0 = vcmask 7168   ;;  %vm213_vm1 = vcmask 523264   ;;  %v534_v0 = vmov 0.0   ;;  %v207_v1 = vld [vmem:[%s156_s28 + $0x10] sm:$0xff] }
  0x34   : > { %v205_v2 = vld [vmem:[%s156_s28] sm:$0xff]  ;;  %v208_v3 = vld [vmem:[%s156_s28 + $0x18] sm:$0xff]  ;;  %v220_v4 = vsel %vm213_vm1, %v207_v1, 0.0  ;;  %v206_v6 = vld [vmem:[%s156_s28 + $0x8] sm:$0xff]  ;;  %v241_v11 = vmul.f32 %v207_v1, %v207_v1 }
  0x35   : > { %s750_s12 = smov (!%p182_p4, %s521_s12), 1  ;;  %v214_v5 = vsel %vm213_vm1, %v205_v2, 0.0  ;;  %221 = vadd.xlane.f32.xlu1 %v220_v4  ;;  %v239_v7 = vmul.f32 %v205_v2, %v205_v2  ;;  %v223_v8 = vsel %vm213_vm1, %v208_v3, 0.0  ;;  %v217_v9 = vsel %vm213_vm1, %v206_v6, 0.0 }
  0x36   : > { %s389_s27 = sshll.u32 %s750_s12, 5  ;;  %215 = vadd.xlane.f32.xlu0 %v214_v5  ;;  %v240_v10 = vmul.f32 %v206_v6, %v206_v6  ;;  %v242_v14 = vmul.f32 %v208_v3, %v208_v3  ;;  %v249_v16 = vsel %vm213_vm1, %v241_v11, 0.0 }
  0x37   : > { %s661_s3 = scalar_lea.vmem %s737_s1, %s389_s27  ;;  %v243_v13 = vsel %vm213_vm1, %v239_v7, 0.0  ;;  %s684_s5 = scalar_lea.vmem %s738_s2, %s389_s27 }
  0x38   : > { %199 = vst.msk [vmem:[%s661_s3 + $0x10] sm:$0xff] %vm196_vm0, %v534_v0  ;;  %197 = vst.msk [vmem:[%s661_s3] sm:$0xff] %vm196_vm0, %v534_v0  ;;  %v246_v12 = vsel %vm213_vm1, %v240_v10, 0.0  ;;  %v252_v15 = vsel %vm213_vm1, %v242_v14, 0.0 }
  0x39   : > { %198 = vst.msk [vmem:[%s661_s3 + $0x8] sm:$0xff] %vm196_vm0, %v534_v0  ;;  %200 = vst.msk [vmem:[%s661_s3 + $0x18] sm:$0xff] %vm196_vm0, %v534_v0  ;;  %224 = vadd.xlane.f32.xlu1 %v223_v8 }
  0x3a   : > { %218 = vadd.xlane.f32.xlu0 %v217_v9  ;;  %202 = vst.msk [vmem:[%s684_s5 + $0x8] sm:$0xff] %vm196_vm0, %v534_v0  ;;  %201 = vst.msk [vmem:[%s684_s5] sm:$0xff] %vm196_vm0, %v534_v0 }
  0x3b   : > { %203 = vst.msk [vmem:[%s684_s5 + $0x10] sm:$0xff] %vm196_vm0, %v534_v0  ;;  %204 = vst.msk [vmem:[%s684_s5 + $0x18] sm:$0xff] %vm196_vm0, %v534_v0 }
  0x3d   : > { %247 = vadd.xlane.f32.xlu1 %v246_v12 }
  0x3e   : > { %244 = vadd.xlane.f32.xlu0 %v243_v13 }
  0x3f   : > { %v211_v17 = vld [vmem:[%s661_s3 + $0x10] sm:$0xff]  ;;  %v209_v18 = vld [vmem:[%s661_s3] sm:$0xff] }
  0x40   : > { %v212_v23 = vld [vmem:[%s661_s3 + $0x18] sm:$0xff]  ;;  %v210_v24 = vld [vmem:[%s661_s3 + $0x8] sm:$0xff] }
  0x41   : > { %253 = vadd.xlane.f32.xlu1 %v252_v15  ;;  %v236_v29 = vld [vmem:[%s684_s5 + $0x8] sm:$0xff]  ;;  %v235_v30 = vld [vmem:[%s684_s5] sm:$0xff] }
  0x42   : > { %250 = vadd.xlane.f32.xlu0 %v249_v16  ;;  %v238_v35 = vld [vmem:[%s684_s5 + $0x18] sm:$0xff]  ;;  %v237_v36 = vld [vmem:[%s684_s5 + $0x10] sm:$0xff] }
  0xc2   : > { %v222_v19 = vpop.xlane.xlu1 %221 }
  0xc3   : > { %v216_v20 = vpop.xlane.xlu0 %215  ;;  %v228_v21 = vadd.f32 %v222_v19, %v211_v17 }
  0xc4   : > { %v226_v22 = vadd.f32 %v216_v20, %v209_v18 }
  0xc5   : > { %233 = vst.msk [vmem:[%s661_s3 + $0x10] sm:$0xff] %vm196_vm0, %v228_v21 }
  0xc6   : > { %231 = vst.msk [vmem:[%s661_s3] sm:$0xff] %vm196_vm0, %v226_v22  ;;  %v225_v25 = vpop.xlane.xlu1 %224 }
  0xc7   : > { %v219_v26 = vpop.xlane.xlu0 %218  ;;  %v229_v27 = vadd.f32 %v225_v25, %v212_v23 }
  0xc8   : > { %v227_v28 = vadd.f32 %v219_v26, %v210_v24 }
  0xc9   : > { %234 = vst.msk [vmem:[%s661_s3 + $0x18] sm:$0xff] %vm196_vm0, %v229_v27 }
  0xca   : > { %232 = vst.msk [vmem:[%s661_s3 + $0x8] sm:$0xff] %vm196_vm0, %v227_v28  ;;  %v248_v31 = vpop.xlane.xlu1 %247 }
  0xcb   : > { %v245_v32 = vpop.xlane.xlu0 %244  ;;  %v256_v33 = vadd.f32 %v248_v31, %v236_v29 }
  0xcc   : > { %v255_v34 = vadd.f32 %v245_v32, %v235_v30 }
  0xcd   : > { %260 = vst.msk [vmem:[%s684_s5 + $0x8] sm:$0xff] %vm196_vm0, %v256_v33 }
  0xce   : > { %259 = vst.msk [vmem:[%s684_s5] sm:$0xff] %vm196_vm0, %v255_v34  ;;  %v254_v37 = vpop.xlane.xlu1 %253 }
  0xcf   : > { %v251_v38 = vpop.xlane.xlu0 %250  ;;  %v258_v39 = vadd.f32 %v254_v37, %v238_v35 }
  0xd0   : > { %v257_v40 = vadd.f32 %v251_v38, %v237_v36 }
  0xd1   : > { %262 = vst.msk [vmem:[%s684_s5 + $0x18] sm:$0xff] %vm196_vm0, %v258_v39 }
  0xd2   : > { %261 = vst.msk [vmem:[%s684_s5 + $0x10] sm:$0xff] %vm196_vm0, %v257_v40 }
  0xd3 PF: > { %s16_s14 = sadd.s32 1, %s529_s14   ;;  %s742_s9 = smov %s513_s10 }
  0xd4   : > { %p13_p7 = scmp.ge.s32.totalorder %s16_s14, 4   ;;  %s743_s10 = smov %s517_s11 }
  0xd5   : > { %s744_s11 = smov %s599_s21  ;;  %s745_s12 = smov %s525_s13 }
  0xd6   : > { %s746_s13 = smov %s748_s16  ;;  %15 = sbr.rel (!%p13_p7) target bundleno = 4 (0x4), region = 80 }
  0xdd   :  { %300 = vsyncpa [#allocation3], 1 }
  0xde   :  { %302 = vsyncpa [#allocation3 + $0x1], 1 }

</bundles_post_ra>
